<compile_context>
chip_gen: v5e
topology: v5e:2x2
jax: 0.10.0
libtpu: 0.0.40
codegen_flags: <defaults>
</compile_context>

<pallas_src>
import jax
import jax.numpy as jnp
from jax.experimental import pallas as pl
from jax.experimental.pallas import tpu as pltpu

_NH = 128  # fused-head width (lane-dense output slab)


def _task_fusion_kernel(x_ref, w_ref, out_ref):
    # x_ref block: (Bb, C, T, HW) bf16 -- HW on the lane axis (multiple of 128).
    bb, c, t, hw = x_ref.shape
    nh = out_ref.shape[-1]

    x = x_ref[...].astype(jnp.float32)                    # upcast, accumulate in f32
    frame_feat = jnp.mean(x, axis=-1)                     # (Bb, C, T) spatial pool (lane reduce)

    # Fused two-head matmul: (Bb*T, C) @ (C, 128) on the MXU.
    ff = jnp.swapaxes(frame_feat, 1, 2).reshape(bb * t, c)        # tiny (C,T) transpose
    heads = jnp.dot(ff, w_ref[...], preferred_element_type=jnp.float32)  # (Bb*T, 128)

    out_ref[...] = heads.reshape(bb, t, nh)               # lane-dense store


def init_params(channels, key):
    k1, k2 = jax.random.split(key, 2)
    w_pnr = jax.random.normal(k1, (channels, 1), jnp.float32) * 0.1
    b_pnr = jnp.zeros((1, 1), jnp.float32)
    w_oscc = jax.random.normal(k2, (channels, 2), jnp.float32) * 0.1
    b_oscc = jnp.zeros((1, 2), jnp.float32)
    return w_pnr, b_pnr, w_oscc, b_oscc


def _pick_block_b(B, per_elem_bytes, budget_bytes=4 * 1024 * 1024):
    """Largest divisor of B whose (double-buffered) block stays small."""
    cap = max(1, budget_bytes // max(per_elem_bytes, 1))
    bb = 1
    for d in range(1, B + 1):
        if B % d == 0 and d <= cap:
            bb = d
    return bb


def task_fusion_forward(x_ncthw, params):
    """x_ncthw: [B, C, T, H, W] float32 (PyTorch video conv layout)."""
    B, C, T, H, W = x_ncthw.shape
    HW = H * W
    w_pnr, b_pnr, w_oscc, b_oscc = params

    # Free, contiguous reshape (no HBM transpose pass); halve HBM bytes via bf16.
    x = x_ncthw.reshape(B, C, T, HW).astype(jnp.bfloat16)

    # Fuse the two heads into one 128-wide padded weight (col 0 = PNR, 1:3 = OSCC).
    w_fused = jnp.zeros((C, _NH), jnp.float32)
    w_fused = w_fused.at[:, 0:1].set(w_pnr)
    w_fused = w_fused.at[:, 1:3].set(w_oscc)

    block_b = _pick_block_b(B, C * T * HW * 2)

    slab = pl.pallas_call(
        _task_fusion_kernel,
        out_shape=jax.ShapeDtypeStruct((B, T, _NH), jnp.float32),
        grid_spec=pltpu.PrefetchScalarGridSpec(
            num_scalar_prefetch=0,
            grid=(B // block_b,),
            in_specs=[
                pl.BlockSpec((block_b, C, T, HW), lambda b: (b, 0, 0, 0)),
                pl.BlockSpec((C, _NH), lambda b: (0, 0)),
            ],
            out_specs=pl.BlockSpec((block_b, T, _NH), lambda b: (b, 0, 0)),
        ),
        compiler_params=pltpu.CompilerParams(
            dimension_semantics=("parallel",),
            vmem_limit_bytes=32 * 1024 * 1024,
        ),
    )(x, w_fused)

    # Tiny post-processing on the lane-dense slab (biases folded here, not in VMEM).
    pnr = slab[:, :, 0] + b_pnr.reshape(1, 1)                       # (B, T)
    oscc = jnp.mean(slab[:, :, 1:3], axis=1) + b_oscc.reshape(1, 2)  # (B, 2)
    return pnr, oscc


def _reference_forward(x_ncthw, params):
    """Pure-JAX reference (same bf16 activation quantization as the kernel)."""
    B, C, T, H, W = x_ncthw.shape
    w_pnr, b_pnr, w_oscc, b_oscc = params
    x = x_ncthw.reshape(B, C, T, H * W).astype(jnp.bfloat16).astype(jnp.float32)
    frame_feat = jnp.mean(x, axis=-1)                     # (B, C, T)
    frame_feat = jnp.swapaxes(frame_feat, 1, 2)           # (B, T, C)
    pnr = jnp.einsum("btc,co->bt", frame_feat, w_pnr) + b_pnr.reshape(1, 1)
    clip_feat = jnp.mean(frame_feat, axis=1)              # (B, C)
    oscc = clip_feat @ w_oscc + b_oscc.reshape(1, 2)
    return pnr, oscc


if __name__ == "__main__":
    key = jax.random.PRNGKey(0)
    kx, kp = jax.random.split(key)

    # Small shapes consistent with a video-clip input: NCTHW = [B, C, T, H, W]
    B, C, T, H, W = 2, 4, 8, 16, 16
    x = jax.random.normal(kx, (B, C, T, H, W), jnp.float32)
    params = init_params(C, kp)

    pnr_logits, oscc_logits = task_fusion_forward(x, params)
    jax.block_until_ready((pnr_logits, oscc_logits))

    assert pnr_logits.shape == (B, T)
    assert oscc_logits.shape == (B, 2)

    pnr_ref, oscc_ref = _reference_forward(x, params)
    assert jnp.allclose(pnr_logits, pnr_ref, atol=1e-2, rtol=1e-2)
    assert jnp.allclose(oscc_logits, oscc_ref, atol=1e-2, rtol=1e-2)

    print("KERNEL_OK")
</pallas_src>

<mosaic_0001>
module attributes {stable_mosaic.version = 11 : i64} {
  func.func @_task_fusion_kernel(%arg0: i32, %arg1: memref<2x4x8x256xbf16, #tpu.memory_space<vmem>>, %arg2: memref<4x128xf32, #tpu.memory_space<vmem>>, %arg3: memref<2x8x128xf32, #tpu.memory_space<vmem>>) attributes {dimension_semantics = [#tpu.dimension_semantics<parallel>], iteration_bounds = array<i64: 1>, scalar_prefetch = 0 : i64, scratch_operands = 0 : i64, tpu.core_type = #tpu.core_type<tc>, window_params = [{transform_indices = @transform_0, window_bounds = array<i64: 2, 4, 8, 256>}, {pipeline_mode = #tpu.pipeline_mode<synchronous>, transform_indices = @transform_1, window_bounds = array<i64: 4, 128>}, {transform_indices = @transform_2, window_bounds = array<i64: 2, 8, 128>}]} {
    %c0 = arith.constant 0 : index
    %c0_0 = arith.constant 0 : index
    %c0_1 = arith.constant 0 : index
    %c0_2 = arith.constant 0 : index
    %0 = vector.load %arg1[%c0, %c0_0, %c0_1, %c0_2] : memref<2x4x8x256xbf16, #tpu.memory_space<vmem>>, vector<2x4x8x256xbf16>
    %1 = arith.extf %0 : vector<2x4x8x256xbf16> to vector<2x4x8x256xf32>
    %cst = arith.constant dense<0.000000e+00> : vector<2x4x8xf32>
    %2 = vector.multi_reduction <add>, %1, %cst [3] : vector<2x4x8x256xf32> to vector<2x4x8xf32>
    %cst_3 = arith.constant 2.560000e+02 : f32
    %3 = vector.broadcast %cst_3 : f32 to vector<2x4x8xf32>
    %4 = arith.divf %2, %3 : vector<2x4x8xf32>
    %5 = tpu.transpose %4, [0, 2, 1] : vector<2x4x8xf32> -> vector<2x8x4xf32>
    %6 = vector.shape_cast %5 : vector<2x8x4xf32> to vector<16x4xf32>
    %c0_4 = arith.constant 0 : index
    %c0_5 = arith.constant 0 : index
    %7 = vector.load %arg2[%c0_4, %c0_5] : memref<4x128xf32, #tpu.memory_space<vmem>>, vector<4x128xf32>
    %cst_6 = arith.constant dense<0.000000e+00> : vector<16x128xf32>
    %8 = tpu.matmul %6, %7, %cst_6 {dimension_numbers = #tpu.dot_dimension_numbers<[1], [0], [0], [1], [0, 0, 1, 1], [], []>} : vector<16x4xf32>, vector<4x128xf32>, vector<16x128xf32> -> vector<16x128xf32>
    %9 = vector.shape_cast %8 : vector<16x128xf32> to vector<2x8x128xf32>
    %c0_7 = arith.constant 0 : index
    %c0_8 = arith.constant 0 : index
    %c0_9 = arith.constant 0 : index
    %10 = vector.load %arg3[%c0_7, %c0_8, %c0_9] : memref<2x8x128xf32, #tpu.memory_space<vmem>>, vector<2x8x128xf32>
    tpu.vector_store %arg3[%c0_7, %c0_8, %c0_9], %9 {strides = array<i32>} : memref<2x8x128xf32, #tpu.memory_space<vmem>>, vector<2x8x128xf32>,
    return
  }
  func.func @transform_0(%arg0: i32) -> (i32, i32, i32, i32) {
    %c0_i32 = arith.constant 0 : i32
    %c0_i32_0 = arith.constant 0 : i32
    %c0_i32_1 = arith.constant 0 : i32
    %c0_i32_2 = arith.constant 0 : i32
    return %arg0, %c0_i32, %c0_i32_0, %c0_i32_1 : i32, i32, i32, i32
  }
  func.func @transform_1(%arg0: i32) -> (i32, i32) {
    %c0_i32 = arith.constant 0 : i32
    %c0_i32_0 = arith.constant 0 : i32
    %c0_i32_1 = arith.constant 0 : i32
    return %c0_i32, %c0_i32_0 : i32, i32
  }
  func.func @transform_2(%arg0: i32) -> (i32, i32, i32) {
    %c0_i32 = arith.constant 0 : i32
    %c0_i32_0 = arith.constant 0 : i32
    %c0_i32_1 = arith.constant 0 : i32
    return %arg0, %c0_i32, %c0_i32_0 : i32, i32, i32
  }
}

</mosaic_0001>

<bundles_post_ra>
// kernel: tpu_custom_call.1
= control target key start
LH: loop header
LB: loop body
LE: loop exit
PB: predicated region body
PF: predicated region fallthrough
CT: control target
= control target key end

     0   :  { %7 = vsyncpa [#allocation3], 0  ;;  %s382_s0 = inlined_call_operand.hbm [shape: bf16[2,4,8,256], index: 0, kind: input, shape index: {}]   ;;  %s383_s1 = inlined_call_operand.hbm [shape: f32[4,128], index: 1, kind: input, shape index: {}]   ;;  %s384_s2 = inlined_call_operand.hbm [shape: f32[2,8,128], index: 2, kind: output, shape index: {}]  }
   0x1   :  { %8 = vsyncpa [#allocation6], 0 }
   0x2   :  { %9 = vsyncpa [#allocation4], 0  ;;  %s14_s11 = sshll.u32 %s382_s0, 4  ;;  %s346_s12 = smov [#allocation2]   ;;  %s15_s11 = int_to_ptr.hbm [resolvable:$true] %s14_s11 }
   0x3   :  { %s16_s13 = sshll.u32 %s346_s12, 4  ;;  %s28_s16 = sshll.u32 %s383_s1, 4  ;;  %s17_s13 = int_to_ptr.vmem [resolvable:$true] %s16_s13  ;;  %s29_s16 = int_to_ptr.hbm [resolvable:$true] %s28_s16 }
   0x4   :  { %s347_s17 = smov 128   ;;  %s348_s18 = smov 8  }
   0x5   :  { %22 = dma.hbm_to_vmem [thread:$0]  %s15_s11, 1024, %s17_s13, [#allocation3], %s347_s17, %s347_s17, %s348_s18  }
   0x6   :  { %s349_s19 = smov [#allocation5]  }
   0x7   :  { %s30_s20 = sshll.u32 %s349_s19, 4  ;;  %s31_s20 = int_to_ptr.vmem [resolvable:$true] %s30_s20 }
   0x8   :  { %33 = dma.hbm_to_vmem [thread:$0]  %s29_s16, 64, %s31_s20, [#allocation6]  }
   0x9   :  { %340 = dma.done.wait [#allocation3], 1024  }
   0xa   :  { %341 = vsyncadd [#allocation3], 4294966272 }
   0xb   :  { %342 = dma.done.wait [#allocation6], 64  }
   0xc   :  { %343 = vsyncadd [#allocation6], 4294967232  ;;  %v46_v0 = vld [vmem:[#allocation2 + $0x20] sm:$0xff]  ;;  %v44_v2 = vld [vmem:[#allocation2 + $0x10] sm:$0xff]  ;;  %v350_v32 = vmov 256.0   ;;  %vm206_vm0 = vcmask 1043456   ;;  %v113_v42 = vlaneseq }
   0xd   :  { %v42_v1 = vld [vmem:[#allocation2] sm:$0xff]  ;;  %v58_v3 = vunpack.c.l.bf16 %v46_v0  ;;  %v59_v4 = vunpack.c.h.bf16 %v46_v0  ;;  %v54_v7 = vunpack.c.l.bf16 %v44_v2  ;;  %v55_v8 = vunpack.c.h.bf16 %v44_v2  ;;  %v47_v9 = vld [vmem:[#allocation2 + $0x28] sm:$0xff]  ;;  %v48_v13 = vld [vmem:[#allocation2 + $0x30] sm:$0xff]  ;;  %s351_s0 = smov [#allocation7]   ;;  %s241_s23 = sshll.u32 %s384_s2, 4  ;;  %s242_s23 = int_to_ptr.hbm [resolvable:$true] %s241_s23 }
   0xe   :  { %v50_v5 = vunpack.c.l.bf16 %v42_v1  ;;  %v51_v6 = vunpack.c.h.bf16 %v42_v1  ;;  %v43_v10 = vld [vmem:[#allocation2 + $0x8] sm:$0xff]  ;;  %v60_v15 = vunpack.c.l.bf16 %v47_v9  ;;  %v61_v16 = vunpack.c.h.bf16 %v47_v9  ;;  %v49_v24 = vld [vmem:[#allocation2 + $0x38] sm:$0xff]  ;;  %v198_v34 = vld [vmem:[#allocation5] sm:$0xf]  ;;  %s239_s1 = sshll.u32 %s351_s0, 4  ;;  %s240_s1 = int_to_ptr.vmem [resolvable:$true] %s239_s1 }
   0xf   :  { %v78_v11 = vadd.f32 %v59_v4, %v58_v3  ;;  %v72_v14 = vadd.f32 %v55_v8, %v54_v7  ;;  %v52_v17 = vunpack.c.l.bf16 %v43_v10  ;;  %v53_v18 = vunpack.c.h.bf16 %v43_v10  ;;  %v45_v25 = vld [vmem:[#allocation2 + $0x18] sm:$0xff]  ;;  %255 = vmatpush.msk.msra.mxu0 %vm206_vm0, %v198_v34  ;;  %258 = vmatpush.msk.msra.mxu1 %vm206_vm0, %v198_v34 }
  0x10   :  { %v66_v12 = vadd.f32 %v51_v6, %v50_v5  ;;  %v62_v19 = vunpack.c.l.bf16 %v48_v13  ;;  %v63_v20 = vunpack.c.h.bf16 %v48_v13  ;;  %v81_v21 = vadd.f32 %v61_v16, %v60_v15 }
  0x11   :  { %79 = vadd.xlane.f32.xlu1 %v78_v11  ;;  %73 = vadd.xlane.f32.xlu2 %v72_v14  ;;  %v69_v22 = vadd.f32 %v53_v18, %v52_v17  ;;  %v64_v26 = vunpack.c.l.bf16 %v49_v24  ;;  %v65_v27 = vunpack.c.h.bf16 %v49_v24  ;;  %v56_v28 = vunpack.c.l.bf16 %v45_v25 }
  0x12   :  { %67 = vadd.xlane.f32.xlu0 %v66_v12  ;;  %v84_v23 = vadd.f32 %v63_v20, %v62_v19  ;;  %v57_v29 = vunpack.c.h.bf16 %v45_v25  ;;  %266 = vrcp.f32 %v350_v32  ;;  %v114_v50 = vand.u32 127, %v113_v42 }
  0x13   :  { %v87_v30 = vadd.f32 %v65_v27, %v64_v26  ;;  %vm123_vm2 = vcmask 1041409   ;;  %vm125_vm3 = vcmask 1042434   ;;  %vm127_vm4 = vcmask 1043459  }
  0x14   :  { %v75_v31 = vadd.f32 %v57_v29, %v56_v28  ;;  %vm199_vm5 = vcmask 31744  }
  0x18   :  { %v267_v33 = vpop.eup %266 }
  0x19   :  { %82 = vadd.xlane.f32.xlu1 %v81_v21  ;;  %85 = vadd.xlane.f32.xlu2 %v84_v23  ;;  %v91_v35 = vmul.f32 256.0, %v267_v33  ;;  %vm95_vm1 = vweird.f32 %v267_v33 }
  0x1a   :  { %70 = vadd.xlane.f32.xlu0 %v69_v22 }
  0x1b   :  { %v92_v36 = vsub.f32 1.0, %v91_v35 }
  0x1d   :  { %v93_v37 = vmul.f32 %v267_v33, %v92_v36 }
  0x1f   :  { %v94_v41 = vadd.f32 %v267_v33, %v93_v37 }
  0x21   :  { %88 = vadd.xlane.f32.xlu1 %v87_v30  ;;  %v96_v43 = vsel %vm95_vm1, %v267_v33, %v94_v41 }
  0x22   :  { %76 = vadd.xlane.f32.xlu0 %v75_v31 }
  0x84   :  { %v80_v38 = vpop.xlane.xlu1 %79  ;;  %v74_v40 = vpop.xlane.xlu2 %73 }
  0x85   :  { %v68_v39 = vpop.xlane.xlu0 %67  ;;  %v101_v51 = vmul.f32 %v96_v43, %v80_v38  ;;  %v99_v56 = vmul.f32 %v96_v43, %v74_v40 }
  0x86   :  { %v97_v46 = vmul.f32 %v96_v43, %v68_v39 }
  0x87   :  { %v119_v57 = vperm.slane %v101_v51, %v114_v50  ;;  %v117_v1 = vperm.slane %v99_v56, %v114_v50 }
  0x88   :  { %v115_v53 = vperm.slane %v97_v46, %v114_v50 }
  0x8c   :  { %v83_v44 = vpop.xlane.xlu1 %82  ;;  %v86_v49 = vpop.xlane.xlu2 %85 }
  0x8d   :  { %v71_v45 = vpop.xlane.xlu0 %70  ;;  %v102_v47 = vmul.f32 %v96_v43, %v83_v44  ;;  %v103_v52 = vmul.f32 %v96_v43, %v86_v49 }
  0x8e   :  { %v98_v48 = vmul.f32 %v96_v43, %v71_v45 }
  0x8f   :  { %v120_v54 = vperm.slane %v102_v47, %v114_v50  ;;  %v121_v58 = vperm.slane %v103_v52, %v114_v50 }
  0x90   :  { %v116_v55 = vperm.slane %v98_v48, %v114_v50 }
  0x91   :  { %v129_v63 = vsel %vm123_vm2, %v120_v54, %v119_v57 }
  0x92   :  { %v124_v0 = vsel %vm123_vm2, %v116_v55, %v115_v53  ;;  %v130_v4 = vsel %vm125_vm3, %v121_v58, %v129_v63 }
  0x93   :  { %v126_v5 = vsel %vm125_vm3, %v117_v1, %v124_v0 }
  0x94   :  { %v89_v59 = vpop.xlane.xlu1 %88 }
  0x95   :  { %v77_v60 = vpop.xlane.xlu0 %76  ;;  %v104_v61 = vmul.f32 %v96_v43, %v89_v59 }
  0x96   :  { %v100_v62 = vmul.f32 %v96_v43, %v77_v60 }
  0x97   :  { %v122_v2 = vperm.slane %v104_v61, %v114_v50 }
  0x98   :  { %v118_v3 = vperm.slane %v100_v62, %v114_v50 }
  0x99   :  { %v131_v6 = vsel %vm127_vm4, %v122_v2, %v130_v4 }
  0x9a   :  { %v128_v7 = vsel %vm127_vm4, %v118_v3, %v126_v5  ;;  %166 = vxpose.xlu0.b32.start.end [1/1] (short) (narrow) %v131_v6, 8 }
  0x9b   :  { %134 = vxpose.xlu2.b32.start.end [1/1] (short) (narrow) %v128_v7, 8 }
 0x134   :  { %v150_v8 = vpop.trf.xlu2 }
 0x135   :  { %256 = vmatmul.msk.f32.vlgmr.msra.gmra.mxu0 %vm199_vm5, %v150_v8 }
 0x13e   :  { %v182_v9 = vpop.trf.xlu0 }
 0x13f   :  { %257 = vmatmul.msk.f32.vlgmr.msra.gmra.mxu1 %vm199_vm5, %v182_v9 }
 0x1b2   :  { %v227_v10 = vpop.f32.mrf.mxu0 }
 0x1b3   :  { %233 = vst [vmem:[#allocation7] sm:$0xff] %v227_v10 }
 0x1bc   :  { %v230_v11 = vpop.f32.mrf.mxu1 }
 0x1bd   :  { %234 = vst [vmem:[#allocation7 + $0x8] sm:$0xff] %v230_v11 }
 0x1be   :  { %247 = dma.vmem_to_hbm [thread:$0]  %s240_s1, 256, %s242_s23, [#allocation4], %s347_s17, %s347_s17, %s348_s18  }
 0x1bf   :  { %344 = dma.done.wait [#allocation4], 256  }
 0x1c0   :  { %345 = vsyncadd [#allocation4], 4294967040 }
 0x1c1   :  { %252 = vsyncpa [#allocation3], 1 }
 0x1c2   :  { %253 = vsyncpa [#allocation6], 1 }
 0x1c3   :  { %254 = vsyncpa [#allocation4], 1 }

</bundles_post_ra>
